<compile_context>
chip_gen: v7x
topology: tpu7x:2x2x1
jax: 0.10.0
libtpu: 0.0.40
codegen_flags: <defaults>
</compile_context>

<pallas_src>
import functools

import jax
import jax.numpy as jnp
from jax.experimental import pallas as pl
from jax.experimental.pallas import tpu as pltpu


def _cdiv(a, b):
    return -(-a // b)


def _round_up(n, m):
    return ((n + m - 1) // m) * m


def _mlp_kernel(x_ref, w_ref, tail_ref, o_ref):
    """Full forward pass for one (block_b, size) batch tile.

    x_ref   : (block_b, size)   input rows
    w_ref   : (3, size, size)   W1..W3, stored (in_features, out_features)
    tail_ref: (5, size)         rows 0..2 = b1..b3, row 3 = w4, [4, 0] = b4
    o_ref   : (1, 1, block_b)   sigmoid(logits), batch on the lane axis
    """
    x = x_ref[...].astype(jnp.float32)          # (block_b, size)
    tail = tail_ref[...].astype(jnp.float32)    # (5, size)

    h = jnp.dot(x, w_ref[0].astype(jnp.float32),
                preferred_element_type=jnp.float32)
    h = jnp.maximum(h + tail[0:1, :], 0.0)

    h = jnp.dot(h, w_ref[1].astype(jnp.float32),
                preferred_element_type=jnp.float32)
    h = jnp.maximum(h + tail[1:2, :], 0.0)

    h = jnp.dot(h, w_ref[2].astype(jnp.float32),
                preferred_element_type=jnp.float32)
    h = jnp.maximum(h + tail[2:3, :], 0.0)

    # Final Linear(size, 1): contract the feature axis of h against w4 in the
    # "NT" orientation so the result comes out (1, block_b) -- batch on lanes,
    # giving an unmasked lane-dense store instead of a width-1 masked store.
    logits = jax.lax.dot_general(
        tail[3:4, :], h,
        dimension_numbers=(((1,), (1,)), ((), ())),
        preferred_element_type=jnp.float32)      # (1, block_b)
    logits = logits + tail[4:5, 0:1]             # + b4 (broadcast over lanes)

    o_ref[...] = jax.nn.sigmoid(logits)[None].astype(o_ref.dtype)


@functools.partial(jax.jit, static_argnames=("block_b",))
def discriminator_forward(x, params, *, block_b=256):
    """x: (B, size) float32.
    params: w1..w3 (size,size) stored (in,out); b1..b3 (size,);
            w4 (size,); b4 () scalar.
    Returns sigmoid probabilities, shape (B, 1)."""
    B, size = x.shape

    # ---- pick the batch tile -------------------------------------------
    block_b = max(8, (int(block_b) // 8) * 8)
    b8 = _round_up(B, 8)
    block_b = min(block_b, b8)                 # don't over-pad tiny batches
    num_tiles = _cdiv(b8, block_b)
    if num_tiles < 2 and b8 >= 16:
        num_tiles = 2                          # keep both v7x TensorCores busy
    block_b = _round_up(_cdiv(b8, num_tiles), 8)   # rebalance, minimal padding
    num_tiles = _cdiv(b8, block_b)
    b_pad = num_tiles * block_b

    if b_pad != B:
        x = jnp.pad(x, ((0, b_pad - B), (0, 0)))

    # ---- pack operands (3 kernel inputs total) ---------------------------
    w_stack = jnp.stack([params["w1"], params["w2"], params["w3"]])  # (3,s,s)
    tail = jnp.zeros((5, size), jnp.float32)
    tail = tail.at[0].set(params["b1"])
    tail = tail.at[1].set(params["b2"])
    tail = tail.at[2].set(params["b3"])
    tail = tail.at[3].set(params["w4"])
    tail = tail.at[4, 0].set(params["b4"])

    flops = 2 * b_pad * size * (3 * size + 1)
    bytes_accessed = 4 * (b_pad * size + w_stack.size + tail.size + b_pad)

    out = pl.pallas_call(
        _mlp_kernel,
        out_shape=jax.ShapeDtypeStruct((num_tiles, 1, block_b), jnp.float32),
        grid_spec=pltpu.PrefetchScalarGridSpec(
            num_scalar_prefetch=0,
            grid=(num_tiles,),
            in_specs=[
                pl.BlockSpec((block_b, size), lambda i: (i, 0)),     # x tile
                pl.BlockSpec((3, size, size), lambda i: (0, 0, 0)),  # W1..W3
                pl.BlockSpec((5, size), lambda i: (0, 0)),           # b1..b3,w4,b4
            ],
            out_specs=pl.BlockSpec((1, 1, block_b), lambda i: (i, 0, 0)),
        ),
        compiler_params=pltpu.CompilerParams(
            dimension_semantics=("parallel",)),
        cost_estimate=pl.CostEstimate(
            flops=flops, transcendentals=b_pad,
            bytes_accessed=bytes_accessed),
    )(x, w_stack, tail)

    # lane-dense (num_tiles, 1, block_b) -> (B, 1) row-major order
    return out.reshape(b_pad, 1)[:B]


def init_params(key, size):
    """Deterministic init mimicking nn.Linear (uniform +/- 1/sqrt(fan_in))."""
    def linear(k, fan_in, fan_out):
        kw, kb = jax.random.split(k)
        bound = 1.0 / jnp.sqrt(fan_in)
        # stored as (in, out) so the forward computes x @ W
        w = jax.random.uniform(kw, (fan_in, fan_out), jnp.float32, -bound, bound)
        b = jax.random.uniform(kb, (fan_out,), jnp.float32, -bound, bound)
        return w, b

    k1, k2, k3, k4 = jax.random.split(key, 4)
    w1, b1 = linear(k1, size, size)
    w2, b2 = linear(k2, size, size)
    w3, b3 = linear(k3, size, size)
    w4, b4 = linear(k4, size, 1)
    return dict(w1=w1, b1=b1, w2=w2, b2=b2, w3=w3, b3=b3,
                w4=w4.reshape(size), b4=b4.reshape(()))


def reference_forward(x, p):
    h = jnp.maximum(x @ p["w1"] + p["b1"], 0.0)
    h = jnp.maximum(h @ p["w2"] + p["b2"], 0.0)
    h = jnp.maximum(h @ p["w3"] + p["b3"], 0.0)
    logits = h @ p["w4"] + p["b4"]
    return jax.nn.sigmoid(logits)[:, None]


if __name__ == "__main__":
    size = 32      # Discriminator(size=32)
    batch = 13     # deliberately NOT a multiple of 8 -> exercises padded tail

    key = jax.random.PRNGKey(0)
    k_params, k_x = jax.random.split(key)
    params = init_params(k_params, size)
    x = jax.random.normal(k_x, (batch, size), jnp.float32)

    out = discriminator_forward(x, params)
    out = jax.block_until_ready(out)

    ref = reference_forward(x, params)
    assert out.shape == (batch, 1), out.shape
    assert jnp.allclose(out, ref, atol=1e-5, rtol=1e-5), "mismatch vs JAX reference"

    print("KERNEL_OK")
</pallas_src>

<mosaic_0001>
module attributes {stable_mosaic.version = 11 : i64} {
  func.func @_mlp_kernel(%arg0: i32, %arg1: memref<8x32xf32, #tpu.memory_space<vmem>>, %arg2: memref<3x32x32xf32, #tpu.memory_space<vmem>>, %arg3: memref<5x32xf32, #tpu.memory_space<vmem>>, %arg4: memref<1x1x8xf32, #tpu.memory_space<vmem>>) attributes {dimension_semantics = [#tpu.dimension_semantics<parallel>], iteration_bounds = array<i64: 2>, scalar_prefetch = 0 : i64, scratch_operands = 0 : i64, tpu.core_type = #tpu.core_type<tc>, window_params = [{transform_indices = @transform_0, window_bounds = array<i64: 8, 32>}, {pipeline_mode = #tpu.pipeline_mode<synchronous>, transform_indices = @transform_1, window_bounds = array<i64: 3, 32, 32>}, {pipeline_mode = #tpu.pipeline_mode<synchronous>, transform_indices = @transform_2, window_bounds = array<i64: 5, 32>}, {transform_indices = @transform_3, window_bounds = array<i64: 1, 1, 8>}]} {
    %c0 = arith.constant 0 : index
    %c0_0 = arith.constant 0 : index
    %0 = vector.load %arg1[%c0, %c0_0] : memref<8x32xf32, #tpu.memory_space<vmem>>, vector<8x32xf32>
    %c0_1 = arith.constant 0 : index
    %c0_2 = arith.constant 0 : index
    %1 = vector.load %arg3[%c0_1, %c0_2] : memref<5x32xf32, #tpu.memory_space<vmem>>, vector<5x32xf32>
    %c0_3 = arith.constant 0 : index
    %c0_4 = arith.constant 0 : index
    %c0_5 = arith.constant 0 : index
    %2 = vector.load %arg2[%c0_3, %c0_4, %c0_5] : memref<3x32x32xf32, #tpu.memory_space<vmem>>, vector<1x32x32xf32>
    %3 = vector.shape_cast %2 : vector<1x32x32xf32> to vector<32x32xf32>
    %cst = arith.constant dense<0.000000e+00> : vector<8x32xf32>
    %4 = tpu.matmul %0, %3, %cst {dimension_numbers = #tpu.dot_dimension_numbers<[1], [0], [0], [1], [0, 0, 1, 1], [], []>} : vector<8x32xf32>, vector<32x32xf32>, vector<8x32xf32> -> vector<8x32xf32>
    %5 = vector.extract_strided_slice %1 {offsets = [0, 0], sizes = [1, 32], strides = [1, 1]} : vector<5x32xf32> to vector<1x32xf32>
    %6 = vector.broadcast %5 : vector<1x32xf32> to vector<8x32xf32>
    %7 = arith.addf %4, %6 : vector<8x32xf32>
    %cst_6 = arith.constant 0.000000e+00 : f32
    %8 = vector.broadcast %cst_6 : f32 to vector<8x32xf32>
    %9 = arith.maximumf %7, %8 : vector<8x32xf32>
    %c1 = arith.constant 1 : index
    %c0_7 = arith.constant 0 : index
    %c0_8 = arith.constant 0 : index
    %10 = vector.load %arg2[%c1, %c0_7, %c0_8] : memref<3x32x32xf32, #tpu.memory_space<vmem>>, vector<1x32x32xf32>
    %11 = vector.shape_cast %10 : vector<1x32x32xf32> to vector<32x32xf32>
    %cst_9 = arith.constant dense<0.000000e+00> : vector<8x32xf32>
    %12 = tpu.matmul %9, %11, %cst_9 {dimension_numbers = #tpu.dot_dimension_numbers<[1], [0], [0], [1], [0, 0, 1, 1], [], []>} : vector<8x32xf32>, vector<32x32xf32>, vector<8x32xf32> -> vector<8x32xf32>
    %13 = vector.extract_strided_slice %1 {offsets = [1, 0], sizes = [1, 32], strides = [1, 1]} : vector<5x32xf32> to vector<1x32xf32>
    %14 = vector.broadcast %13 : vector<1x32xf32> to vector<8x32xf32>
    %15 = arith.addf %12, %14 : vector<8x32xf32>
    %cst_10 = arith.constant 0.000000e+00 : f32
    %16 = vector.broadcast %cst_10 : f32 to vector<8x32xf32>
    %17 = arith.maximumf %15, %16 : vector<8x32xf32>
    %c2 = arith.constant 2 : index
    %c0_11 = arith.constant 0 : index
    %c0_12 = arith.constant 0 : index
    %18 = vector.load %arg2[%c2, %c0_11, %c0_12] : memref<3x32x32xf32, #tpu.memory_space<vmem>>, vector<1x32x32xf32>
    %19 = vector.shape_cast %18 : vector<1x32x32xf32> to vector<32x32xf32>
    %cst_13 = arith.constant dense<0.000000e+00> : vector<8x32xf32>
    %20 = tpu.matmul %17, %19, %cst_13 {dimension_numbers = #tpu.dot_dimension_numbers<[1], [0], [0], [1], [0, 0, 1, 1], [], []>} : vector<8x32xf32>, vector<32x32xf32>, vector<8x32xf32> -> vector<8x32xf32>
    %21 = vector.extract_strided_slice %1 {offsets = [2, 0], sizes = [1, 32], strides = [1, 1]} : vector<5x32xf32> to vector<1x32xf32>
    %22 = vector.broadcast %21 : vector<1x32xf32> to vector<8x32xf32>
    %23 = arith.addf %20, %22 : vector<8x32xf32>
    %cst_14 = arith.constant 0.000000e+00 : f32
    %24 = vector.broadcast %cst_14 : f32 to vector<8x32xf32>
    %25 = arith.maximumf %23, %24 : vector<8x32xf32>
    %26 = vector.extract_strided_slice %1 {offsets = [3, 0], sizes = [1, 32], strides = [1, 1]} : vector<5x32xf32> to vector<1x32xf32>
    %cst_15 = arith.constant dense<0.000000e+00> : vector<1x8xf32>
    %27 = tpu.matmul %26, %25, %cst_15 {dimension_numbers = #tpu.dot_dimension_numbers<[1], [1], [0], [0], [0, 0, 1, 0], [], []>} : vector<1x32xf32>, vector<8x32xf32>, vector<1x8xf32> -> vector<1x8xf32>
    %28 = vector.extract_strided_slice %1 {offsets = [4, 0], sizes = [1, 1], strides = [1, 1]} : vector<5x32xf32> to vector<1x1xf32>
    %29 = vector.broadcast %28 : vector<1x1xf32> to vector<1x8xf32>
    %30 = arith.addf %27, %29 : vector<1x8xf32>
    %31 = arith.negf %30 : vector<1x8xf32>
    %32 = math.exp %31 : vector<1x8xf32>
    %cst_16 = arith.constant 1.000000e+00 : f32
    %33 = vector.broadcast %cst_16 : f32 to vector<1x8xf32>
    %34 = arith.addf %33, %32 : vector<1x8xf32>
    %35 = arith.divf %33, %34 : vector<1x8xf32>
    %36 = vector.shape_cast %35 : vector<1x8xf32> to vector<1x1x8xf32>
    %c0_17 = arith.constant 0 : index
    %c0_18 = arith.constant 0 : index
    %c0_19 = arith.constant 0 : index
    %37 = vector.load %arg4[%c0_17, %c0_18, %c0_19] : memref<1x1x8xf32, #tpu.memory_space<vmem>>, vector<1x1x8xf32>
    tpu.vector_store %arg4[%c0_17, %c0_18, %c0_19], %36 {strides = array<i32>} : memref<1x1x8xf32, #tpu.memory_space<vmem>>, vector<1x1x8xf32>,
    return
  }
  func.func @transform_0(%arg0: i32) -> (i32, i32) {
    %c0_i32 = arith.constant 0 : i32
    %c0_i32_0 = arith.constant 0 : i32
    return %arg0, %c0_i32 : i32, i32
  }
  func.func @transform_1(%arg0: i32) -> (i32, i32, i32) {
    %c0_i32 = arith.constant 0 : i32
    %c0_i32_0 = arith.constant 0 : i32
    %c0_i32_1 = arith.constant 0 : i32
    %c0_i32_2 = arith.constant 0 : i32
    return %c0_i32, %c0_i32_0, %c0_i32_1 : i32, i32, i32
  }
  func.func @transform_2(%arg0: i32) -> (i32, i32) {
    %c0_i32 = arith.constant 0 : i32
    %c0_i32_0 = arith.constant 0 : i32
    %c0_i32_1 = arith.constant 0 : i32
    return %c0_i32, %c0_i32_0 : i32, i32
  }
  func.func @transform_3(%arg0: i32) -> (i32, i32, i32) {
    %c0_i32 = arith.constant 0 : i32
    %c0_i32_0 = arith.constant 0 : i32
    %c0_i32_1 = arith.constant 0 : i32
    return %arg0, %c0_i32, %c0_i32_0 : i32, i32, i32
  }
}

</mosaic_0001>

<bundles_post_ra>
// kernel: discriminator_forward.1
= control target key start
LH: loop header
LB: loop body
LE: loop exit
PB: predicated region body
PF: predicated region fallthrough
CT: control target
= control target key end

     0   :  { %s696_s12 = smov 0   ;;  %s765_s0 = inlined_call_operand.vmem [shape: f32[16,32], index: 0, kind: input, shape index: {}]   ;;  %s766_s1 = inlined_call_operand.vmem [shape: f32[3,32,32], index: 1, kind: input, shape index: {}]   ;;  %s767_s2 = inlined_call_operand.vmem [shape: f32[5,32], index: 2, kind: input, shape index: {}]   ;;  %s768_s3 = inlined_call_operand.vmem [shape: f32[2,1,8], index: 3, kind: output, shape index: {}]  }
   0x1 LB: > { %s552_s13 = sadd.s32 4294967295, %s670_s12   ;;  %p556_p0 = scmp.ge.s32.totalorder %s670_s12, 1  ;;  %s670_s12 = sphi %s696_s12, %s13_s12  }
   0x2   : > { %p136_p1 = scmp.lt.s32.totalorder %s670_s12, 3 }
   0x4   : > { %p137_p2 = pnand %p556_p0, %p136_p1 }
   0x5   : > { %v166_v0 = vld [vmem:[%s766_s1] sm:$0xff] (!%p137_p2)  ;;  %v167_v1 = vld [vmem:[%s766_s1 + $0x8] sm:$0xff] (!%p137_p2)  ;;  %v168_v2 = vld [vmem:[%s766_s1 + $0x10] sm:$0xff] (!%p137_p2)  ;;  %v672_v3 = vmov (!%p137_p2), 0.0|0.0   ;;  %vm673_vm0 = vmmov (!%p137_p2), 0   ;;  %v674_v6 = vmov (!%p137_p2), 0.0   ;;  %v170_v18 = vlaneseq (!%p137_p2) }
   0x6   : > { %140 = sbr.rel (%p137_p2) target bundleno = 909 (0x38d), region = 32  ;;  %629 = vmatprep.subr.bf16.mxu0 (!%p137_p2), %v672_v3  ;;  %v630_v4 = vpack.c.bf16 (!%p137_p2), %v167_v1, %v166_v0  ;;  %v169_v5 = vld [vmem:[%s766_s1 + $0x18] sm:$0xff] (!%p137_p2)  ;;  %599 = vmatprep.mubr.msk.f32.mxu0 (!%p137_p2), %vm673_vm0, %v674_v6  ;;  %p157_p3 = scmp.lt.s32.totalorder (!%p137_p2), %s552_s13, 1  ;;  %v559_v7 = vld [vmem:[%s766_s1 + $0x20] sm:$0xff] (!%p137_p2)  ;;  %v560_v8 = vld [vmem:[%s766_s1 + $0x28] sm:$0xff] (!%p137_p2)  ;;  %vm174_vm1 = vcmask (!%p137_p2), 261120  }
   0x7   : > { %635 = vmatprep.subr.bf16.mxu1 (!%p137_p2), %v672_v3  ;;  %v636_v9 = vpack.c.bf16 (!%p137_p2), %v560_v8, %v559_v7  ;;  %610 = vmatprep.mubr.msk.f32.mxu1 (!%p137_p2), %vm673_vm0, %v674_v6  ;;  %v633_v10 = vpack.c.bf16 (!%p137_p2), %v169_v5, %v168_v2  ;;  %v561_v12 = vld [vmem:[%s766_s1 + $0x30] sm:$0xff] (!%p137_p2)  ;;  %v562_v13 = vld [vmem:[%s766_s1 + $0x38] sm:$0xff] (!%p137_p2)  ;;  %v564_v15 = vld [vmem:[%s766_s1 + $0x40] sm:$0xff] (!%p137_p2)  ;;  %v171_v19 = vshrl.u32 (!%p137_p2), %v170_v18, 7  ;;  %v675_v36 = vmov (!%p137_p2), 0  }
   0x8   : > { %631 = vmatpush3.bf16.msra.mxu0 (!%p137_p2), %v630_v4  ;;  %v639_v14 = vpack.c.bf16 (!%p137_p2), %v562_v13, %v561_v12  ;;  %v565_v16 = vld [vmem:[%s766_s1 + $0x48] sm:$0xff] (!%p137_p2)  ;;  %v165_v21 = vld [vmem:[%s767_s2] sm:$0x1f] (!%p137_p2)  ;;  %v566_v27 = vld [vmem:[%s766_s1 + $0x50] sm:$0xff] (!%p137_p2)  ;;  %659 = vset.pattern.permute.xlu0 (!%p137_p2), %v675_v36  ;;  %vm503_vm2 = vcmask (!%p137_p2), 57344  }
   0x9   : > { %632 = vmatprep.subr.bf16.mxu0 (!%p137_p2), %v672_v3  ;;  %637 = vmatpush3.bf16.msra.mxu1 (!%p137_p2), %v636_v9  ;;  %v642_v17 = vpack.c.bf16 (!%p137_p2), %v565_v16, %v564_v15  ;;  %v172_v20 = vsub.s32 (!%p137_p2), 0, %v171_v19  ;;  %v567_v28 = vld [vmem:[%s766_s1 + $0x58] sm:$0xff] (!%p137_p2)  ;;  %v256_v30 = vsub.s32 (!%p137_p2), 1, %v171_v19  ;;  %v339_v37 = vsub.s32 (!%p137_p2), 2, %v171_v19 }
   0xa   : > { %638 = vmatprep.subr.bf16.mxu1 (!%p137_p2), %v672_v3  ;;  %v645_v29 = vpack.c.bf16 (!%p137_p2), %v567_v28, %v566_v27  ;;  %417 = vperm.xlu0 (!%p137_p2), %659, %v165_v21   ;;  %v419_v43 = vrot.slane (!%p137_p2), %v165_v21, 3 }
   0xb   : > { %v173_v22 = vrot.slane (!%p137_p2), %v165_v21, %v172_v20  ;;  %v257_v31 = vrot.slane (!%p137_p2), %v165_v21, %v256_v30  ;;  %v340_v38 = vrot.slane (!%p137_p2), %v165_v21, %v339_v37 }
   0xc   : > { %634 = vmatpush3.bf16.msra.mxu0 (!%p137_p2), %v633_v10 }
   0xd   : > { %s770_s13 = smov (!%p157_p3, %s552_s13), 1  ;;  %641 = vmatprep.subr.bf16.mxu0 %v672_v3  ;;  %640 = vmatpush3.bf16.msra.mxu1 %v639_v14 }
   0xe   : > { %s557_s26 = sshll.u32 %s770_s13, 3  ;;  %624 = vmatprep.subr.mxu1 %v674_v6  ;;  %s163_s21 = scalar_lea.vmem %s768_s3, %s770_s13 }
   0xf   : > { %s160_s29 = scalar_lea.vmem %s765_s0, %s557_s26 }
  0x10   : > { %v164_v11 = vld [vmem:[%s160_s29] sm:$0xff] }
  0x11   : > { %600 = vmatmul.mubr.msk.f32.vlgmr.msra.gmra.mrb[0].mxu0 %vm174_vm1, %v164_v11 }
  0x12   : > { %621 = vmatprep.mubr.msk.f32.mxu0 %vm673_vm0, %v674_v6  ;;  %643 = vmatpush3.bf16.msra.mxu0 %v642_v17 }
  0x13   : > { %644 = vmatprep.subr.bf16.mxu0 %v672_v3 }
  0x16   : > { %646 = vmatpush3.bf16.msra.mxu0 %v645_v29 }
  0x89   : > { %v418_v44 = vpop.permute.xlu0 %417 }
  0x8a   : > { %v420_v45 = vrot.slane %v418_v44, 4 }
  0xe4   : > { %v244_v23 = vpop.f32.mrb[0].mxu0 }
  0xe5   : > { %v245_v24 = vadd.f32 %v244_v23, %v173_v22  ;;  %v601_v25 = vpop.f32.mrb[1].mxu0 }
  0xe7   : > { %v248_v26 = vmax.f32 %v245_v24, 0.0 }
  0xe9   : > { %611 = vmatmul.mubr.msk.f32.vlgmr.msra.gmra.mrb[0].mxu1 %vm174_vm1, %v248_v26 }
  0xea   : > { %626 = vmatprep.mubr.msk.f32.mxu1 %vm673_vm0, %v674_v6 }
 0x1bc   : > { %v327_v32 = vpop.f32.mrb[0].mxu1 }
 0x1bd   : > { %v328_v33 = vadd.f32 %v327_v32, %v257_v31  ;;  %v612_v34 = vpop.f32.mrb[1].mxu1 }
 0x1bf   : > { %v331_v35 = vmax.f32 %v328_v33, 0.0 }
 0x1c1   : > { %622 = vmatmul.mubr.msk.f32.vlgmr.msra.gmra.mrb[2].mxu0 %vm174_vm1, %v331_v35 }
 0x294   : > { %v410_v39 = vpop.f32.mrb[2].mxu0 }
 0x295   : > { %v411_v40 = vadd.f32 %v410_v39, %v340_v38  ;;  %v623_v41 = vpop.f32.mrb[3].mxu0 }
 0x297   : > { %v414_v42 = vmax.f32 %v411_v40, 0.0 }
 0x299   : > { %625 = vmatpush3.xpose.msk.msra.mxu1 %vm174_vm1, %v414_v42 }
 0x29c   : > { %627 = vmatmul.mubr.msk.f32.vlgmr.msra.gmra.mrb[2].mxu1 %vm174_vm1, %v419_v43 }
 0x36f   : > { %v493_v46 = vpop.f32.mrb[2].mxu1 }
 0x370   : > { %v494_v47 = vadd.f32 %v493_v46, %v420_v45  ;;  %v628_v48 = vpop.f32.mrb[3].mxu1 }
 0x372   : > { %v571_v49 = vmul.f32 -1.442695, %v494_v47 }
 0x374   : > { %660 = vpow2.f32 %v571_v49 }
 0x37e   : > { %v661_v50 = vpop.eup %660 }
 0x37f   : > { %v500_v51 = vadd.f32 1.0, %v661_v50 }
 0x381   : > { %662 = vrcp.f32 %v500_v51 }
 0x38b   : > { %v663_v52 = vpop.eup %662 }
 0x38c   : > { %504 = vst.msk [vmem:[%s163_s21] sm:$0x1] %vm503_vm2, %v663_v52 }
 0x38d PF: > { %s13_s12 = sadd.s32 1, %s670_s12  }
 0x38e   : > { %p10_p4 = scmp.ge.s32.totalorder %s13_s12, 4  }
 0x390   :  { %12 = sbr.rel (!%p10_p4) target bundleno = 1 (0x1), region = 64 }

</bundles_post_ra>
